<compile_context>
chip_gen: v5e
topology: v5e:2x2
jax: 0.10.0
libtpu: 0.0.40
codegen_flags: <defaults>
</compile_context>

<pallas_src>
import math

import numpy as np
import jax
import jax.numpy as jnp
from jax.experimental import pallas as pl
from jax.experimental.pallas import tpu as pltpu


def _build_avg_matrices(kernel_sizes, L):
    """Static (K, L, L) averaging matrices with edge-replication baked in.

    A[j, t, s] = (1/k_j) * #{window offsets o in [0, k_j) :
                             clip(t - front_j + o, 0, L-1) == s}
    which is exactly AvgPool1d(kernel=k_j, stride=1) applied to the
    edge-replicated (front_j / end_j) padded series.
    """
    K = len(kernel_sizes)
    A = np.zeros((K, L, L), dtype=np.float32)
    for j, k in enumerate(kernel_sizes):
        end = (k - 1) // 2
        front = k - 1 - end
        t = np.arange(L)[:, None]                      # (L, 1)
        o = np.arange(k)[None, :]                      # (1, k)
        s = np.clip(t - front + o, 0, L - 1)           # (L, k) source index
        rows = np.broadcast_to(t, (L, k))
        np.add.at(A[j], (rows, s), 1.0 / k)
    return jnp.asarray(A)


def make_decomp_kernel(K):
    """Kernel body: one (L, TN) lane tile per grid step."""

    def kernel(w_ref, b_ref, a_ref, x_ref, res_ref, mean_ref):
        x = x_ref[...].astype(jnp.float32)             # (L, TN)

        # --- softmax over the K mixing logits: logit_j = x * W[j] + b[j] ---
        logits = [x * w_ref[j] + b_ref[j] for j in range(K)]
        m = logits[0]
        for j in range(1, K):
            m = jnp.maximum(m, logits[j])
        exps = [jnp.exp(logits[j] - m) for j in range(K)]   # EUP
        denom = exps[0]
        for j in range(1, K):
            denom = denom + exps[j]
        inv = pl.reciprocal(denom)                     # exact; EUP path

        # --- fused: mean = sum_j (A_j @ x) * softmax_j (MXU matmuls) ---
        mean = jnp.zeros_like(x)
        for j in range(K):
            ma = jnp.dot(a_ref[j], x, preferred_element_type=jnp.float32)
            mean = mean + ma * (exps[j] * inv)

        mean_ref[...] = mean.astype(mean_ref.dtype)
        res_ref[...] = (x - mean).astype(res_ref.dtype)

    return kernel


def series_decomp_multi(x, W, b, kernel_sizes, *, tn=None):
    """x: [B, L, D]; W, b: (K,) params of Linear(1, K). Returns (res, moving_mean)."""
    B, L, D = x.shape
    kernel_sizes = tuple(int(k) for k in kernel_sizes)
    K = len(kernel_sizes)

    # Static averaging matrices (constant folded; no padded tensor in HBM).
    A = _build_avg_matrices(kernel_sizes, L)           # (K, L, L) f32

    # Lane-dense 2D view: fold batch+channels onto the 128-lane axis.
    N = B * D
    x2 = jnp.transpose(x, (1, 0, 2)).reshape(L, N)     # (L, N)

    # Lane tile: multiple of 128 when possible, capped at 256 for v7x VMEM.
    if tn is None:
        if N % 256 == 0:
            tn = 256
        elif N % 128 == 0:
            tn = 128
        else:
            tn = N                                     # small N: single full block
    assert N % tn == 0
    grid = (N // tn,)

    kernel = make_decomp_kernel(K)
    res2, mean2 = pl.pallas_call(
        kernel,
        out_shape=(
            jax.ShapeDtypeStruct((L, N), x.dtype),
            jax.ShapeDtypeStruct((L, N), x.dtype),
        ),
        grid=grid,
        in_specs=[
            pl.BlockSpec(memory_space=pltpu.SMEM),            # W (K,)
            pl.BlockSpec(memory_space=pltpu.SMEM),            # b (K,)
            pl.BlockSpec((K, L, L), lambda i: (0, 0, 0)),     # A (VMEM-resident)
            pl.BlockSpec((L, tn), lambda i: (0, i)),          # x (read once)
        ],
        out_specs=(
            pl.BlockSpec((L, tn), lambda i: (0, i)),          # res
            pl.BlockSpec((L, tn), lambda i: (0, i)),          # moving_mean
        ),
        compiler_params=pltpu.CompilerParams(
            dimension_semantics=("parallel",),
        ),
    )(W, b, A, x2)

    res = res2.reshape(L, B, D).transpose(1, 0, 2)
    mean = mean2.reshape(L, B, D).transpose(1, 0, 2)
    return res, mean


def series_decomp_multi_ref(x, W, b, kernel_sizes):
    """Pure-JAX reference matching the PyTorch forward semantics."""
    B, L, D = x.shape
    mms = []
    for k in kernel_sizes:
        front = k - 1 - math.floor((k - 1) // 2)
        end = math.floor((k - 1) // 2)
        xp = jnp.concatenate(
            [
                jnp.repeat(x[:, 0:1, :], front, axis=1),
                x,
                jnp.repeat(x[:, -1:, :], end, axis=1),
            ],
            axis=1,
        )
        windows = jnp.stack([xp[:, o:o + L, :] for o in range(k)], axis=0)
        mms.append(windows.mean(axis=0))
    mm = jnp.stack(mms, axis=-1)                                   # (B,L,D,K)
    logits = x[..., None] * W[None, None, None, :] + b[None, None, None, :]
    wts = jax.nn.softmax(logits, axis=-1)
    mean = jnp.sum(mm * wts, axis=-1)
    return x - mean, mean


if __name__ == "__main__":
    key = jax.random.PRNGKey(0)
    B, L, D = 2, 16, 8
    kernel_sizes = (3, 7)
    K = len(kernel_sizes)

    x = jax.random.normal(key, (B, L, D), dtype=jnp.float32)
    # Deterministic params of nn.Linear(1, K): weight (K,1) flattened, bias (K,)
    W = jnp.linspace(0.3, -0.5, K, dtype=jnp.float32)
    b = jnp.linspace(0.1, 0.2, K, dtype=jnp.float32)

    res, mean = series_decomp_multi(x, W, b, kernel_sizes)
    res = jax.block_until_ready(res)
    mean = jax.block_until_ready(mean)

    res_ref, mean_ref = series_decomp_multi_ref(x, W, b, kernel_sizes)
    assert jnp.allclose(res, res_ref, rtol=1e-5, atol=1e-5)
    assert jnp.allclose(mean, mean_ref, rtol=1e-5, atol=1e-5)

    print("KERNEL_OK")
</pallas_src>

<mosaic_0001>
module attributes {stable_mosaic.version = 11 : i64} {
  func.func @kernel(%arg0: i32, %arg1: memref<2xf32, #tpu.memory_space<smem>>, %arg2: memref<2xf32, #tpu.memory_space<smem>>, %arg3: memref<2x16x16xf32, #tpu.memory_space<vmem>>, %arg4: memref<16x16xf32, #tpu.memory_space<vmem>>, %arg5: memref<16x16xf32, #tpu.memory_space<vmem>>, %arg6: memref<16x16xf32, #tpu.memory_space<vmem>>) attributes {dimension_semantics = [#tpu.dimension_semantics<parallel>], iteration_bounds = array<i64: 1>, scalar_prefetch = 0 : i64, scratch_operands = 0 : i64, tpu.core_type = #tpu.core_type<tc>, window_params = [{transform_indices = @transform_0, window_bounds = array<i64: 2>}, {transform_indices = @transform_1, window_bounds = array<i64: 2>}, {pipeline_mode = #tpu.pipeline_mode<synchronous>, transform_indices = @transform_2, window_bounds = array<i64: 2, 16, 16>}, {transform_indices = @transform_3, window_bounds = array<i64: 16, 16>}, {transform_indices = @transform_4, window_bounds = array<i64: 16, 16>}, {transform_indices = @transform_5, window_bounds = array<i64: 16, 16>}]} {
    %c0 = arith.constant 0 : index
    %c0_0 = arith.constant 0 : index
    %0 = vector.load %arg4[%c0, %c0_0] : memref<16x16xf32, #tpu.memory_space<vmem>>, vector<16x16xf32>
    %c0_1 = arith.constant 0 : index
    %1 = memref.load %arg1[%c0_1] : memref<2xf32, #tpu.memory_space<smem>>
    %2 = vector.broadcast %1 : f32 to vector<16x16xf32>
    %3 = arith.mulf %0, %2 : vector<16x16xf32>
    %c0_2 = arith.constant 0 : index
    %4 = memref.load %arg2[%c0_2] : memref<2xf32, #tpu.memory_space<smem>>
    %5 = vector.broadcast %4 : f32 to vector<16x16xf32>
    %6 = arith.addf %3, %5 : vector<16x16xf32>
    %c1 = arith.constant 1 : index
    %7 = memref.load %arg1[%c1] : memref<2xf32, #tpu.memory_space<smem>>
    %8 = vector.broadcast %7 : f32 to vector<16x16xf32>
    %9 = arith.mulf %0, %8 : vector<16x16xf32>
    %c1_3 = arith.constant 1 : index
    %10 = memref.load %arg2[%c1_3] : memref<2xf32, #tpu.memory_space<smem>>
    %11 = vector.broadcast %10 : f32 to vector<16x16xf32>
    %12 = arith.addf %9, %11 : vector<16x16xf32>
    %13 = arith.maximumf %6, %12 : vector<16x16xf32>
    %14 = arith.subf %6, %13 : vector<16x16xf32>
    %15 = math.exp %14 : vector<16x16xf32>
    %16 = arith.subf %12, %13 : vector<16x16xf32>
    %17 = math.exp %16 : vector<16x16xf32>
    %18 = arith.addf %15, %17 : vector<16x16xf32>
    %19 = tpu.reciprocal %18 : vector<16x16xf32> -> vector<16x16xf32>
    %cst = arith.constant 0.000000e+00 : f32
    %20 = vector.broadcast %cst : f32 to vector<16x16xf32>
    %c0_4 = arith.constant 0 : index
    %c0_5 = arith.constant 0 : index
    %c0_6 = arith.constant 0 : index
    %21 = vector.load %arg3[%c0_4, %c0_5, %c0_6] : memref<2x16x16xf32, #tpu.memory_space<vmem>>, vector<1x16x16xf32>
    %22 = vector.shape_cast %21 : vector<1x16x16xf32> to vector<16x16xf32>
    %cst_7 = arith.constant dense<0.000000e+00> : vector<16x16xf32>
    %23 = tpu.matmul %22, %0, %cst_7 {dimension_numbers = #tpu.dot_dimension_numbers<[1], [0], [0], [1], [0, 0, 1, 1], [], []>} : vector<16x16xf32>, vector<16x16xf32>, vector<16x16xf32> -> vector<16x16xf32>
    %24 = arith.mulf %15, %19 : vector<16x16xf32>
    %25 = arith.mulf %23, %24 : vector<16x16xf32>
    %26 = arith.addf %20, %25 : vector<16x16xf32>
    %c1_8 = arith.constant 1 : index
    %c0_9 = arith.constant 0 : index
    %c0_10 = arith.constant 0 : index
    %27 = vector.load %arg3[%c1_8, %c0_9, %c0_10] : memref<2x16x16xf32, #tpu.memory_space<vmem>>, vector<1x16x16xf32>
    %28 = vector.shape_cast %27 : vector<1x16x16xf32> to vector<16x16xf32>
    %cst_11 = arith.constant dense<0.000000e+00> : vector<16x16xf32>
    %29 = tpu.matmul %28, %0, %cst_11 {dimension_numbers = #tpu.dot_dimension_numbers<[1], [0], [0], [1], [0, 0, 1, 1], [], []>} : vector<16x16xf32>, vector<16x16xf32>, vector<16x16xf32> -> vector<16x16xf32>
    %30 = arith.mulf %17, %19 : vector<16x16xf32>
    %31 = arith.mulf %29, %30 : vector<16x16xf32>
    %32 = arith.addf %26, %31 : vector<16x16xf32>
    %c0_12 = arith.constant 0 : index
    %c0_13 = arith.constant 0 : index
    %33 = vector.load %arg6[%c0_12, %c0_13] : memref<16x16xf32, #tpu.memory_space<vmem>>, vector<16x16xf32>
    tpu.vector_store %arg6[%c0_12, %c0_13], %32 {strides = array<i32>} : memref<16x16xf32, #tpu.memory_space<vmem>>, vector<16x16xf32>,
    %34 = arith.subf %0, %32 : vector<16x16xf32>
    %c0_14 = arith.constant 0 : index
    %c0_15 = arith.constant 0 : index
    %35 = vector.load %arg5[%c0_14, %c0_15] : memref<16x16xf32, #tpu.memory_space<vmem>>, vector<16x16xf32>
    tpu.vector_store %arg5[%c0_14, %c0_15], %34 {strides = array<i32>} : memref<16x16xf32, #tpu.memory_space<vmem>>, vector<16x16xf32>,
    return
  }
  func.func @transform_0(%arg0: i32) -> i32 {
    %c0_i32 = arith.constant 0 : i32
    %c0_i32_0 = arith.constant 0 : i32
    return %c0_i32 : i32
  }
  func.func @transform_1(%arg0: i32) -> i32 {
    %c0_i32 = arith.constant 0 : i32
    %c0_i32_0 = arith.constant 0 : i32
    return %c0_i32 : i32
  }
  func.func @transform_2(%arg0: i32) -> (i32, i32, i32) {
    %c0_i32 = arith.constant 0 : i32
    %c0_i32_0 = arith.constant 0 : i32
    %c0_i32_1 = arith.constant 0 : i32
    %c0_i32_2 = arith.constant 0 : i32
    return %c0_i32, %c0_i32_0, %c0_i32_1 : i32, i32, i32
  }
  func.func @transform_3(%arg0: i32) -> (i32, i32) {
    %c0_i32 = arith.constant 0 : i32
    %c0_i32_0 = arith.constant 0 : i32
    return %c0_i32, %arg0 : i32, i32
  }
  func.func @transform_4(%arg0: i32) -> (i32, i32) {
    %c0_i32 = arith.constant 0 : i32
    %c0_i32_0 = arith.constant 0 : i32
    return %c0_i32, %arg0 : i32, i32
  }
  func.func @transform_5(%arg0: i32) -> (i32, i32) {
    %c0_i32 = arith.constant 0 : i32
    %c0_i32_0 = arith.constant 0 : i32
    return %c0_i32, %arg0 : i32, i32
  }
}

</mosaic_0001>

<bundles_post_ra>
// kernel: tpu_custom_call.1
= control target key start
LH: loop header
LB: loop body
LE: loop exit
PB: predicated region body
PF: predicated region fallthrough
CT: control target
= control target key end

     0   :  { %11 = vsyncpa [#allocation5], 0  ;;  %s518_s0 = inlined_call_operand.hbm [shape: f32[2], index: 0, kind: input, shape index: {}]   ;;  %s519_s1 = inlined_call_operand.hbm [shape: f32[2], index: 1, kind: input, shape index: {}]   ;;  %s520_s2 = inlined_call_operand.hbm [shape: f32[2,16,16], index: 2, kind: input, shape index: {}]   ;;  %s521_s3 = inlined_call_operand.hbm [shape: f32[16,16], index: 3, kind: input, shape index: {}]   ;;  %s522_s4 = inlined_call_operand.hbm [shape: f32[16,16], index: 4, kind: output, shape index: {0}]   ;;  %s523_s5 = inlined_call_operand.hbm [shape: f32[16,16], index: 5, kind: output, shape index: {1}]  }
   0x1   :  { %12 = vsyncpa [#allocation7], 0 }
   0x2   :  { %13 = vsyncpa [#allocation3], 0 }
   0x3   :  { %14 = vsyncpa [#allocation10], 0 }
   0x4   :  { %15 = vsyncpa [#allocation4], 0 }
   0x5   :  { %16 = vsyncpa [#allocation13], 0  ;;  %s22_s20 = sshll.u32 %s518_s0, 4  ;;  %s31_s23 = sshll.u32 %s519_s1, 4  ;;  %s23_s20 = int_to_ptr.hbm [resolvable:$true] %s22_s20  ;;  %s32_s23 = int_to_ptr.hbm [resolvable:$true] %s31_s23 }
   0x6   :  { %s424_s24 = smov [#allocation2]   ;;  %s425_s25 = smov [#allocation6]  }
   0x7   :  { %25 = dma.hbm_to_smem %s23_s20, 16, %s424_s24, [#allocation5]  }
   0x8   :  { %34 = dma.hbm_to_smem %s32_s23, 16, %s425_s25, [#allocation7]  }
   0x9   :  { %s39_s28 = sshll.u32 %s520_s2, 4  ;;  %s426_s29 = smov [#allocation8]   ;;  %s40_s28 = int_to_ptr.hbm [resolvable:$true] %s39_s28 }
   0xa   :  { %s41_s30 = sshll.u32 %s426_s29, 4  ;;  %s52_s7 = sshll.u32 %s521_s3, 4  ;;  %s42_s30 = int_to_ptr.vmem [resolvable:$true] %s41_s30  ;;  %s53_s7 = int_to_ptr.hbm [resolvable:$true] %s52_s7 }
   0xb   :  { %s427_s8 = smov 128   ;;  %s428_s9 = smov 8  }
   0xc   :  { %47 = dma.hbm_to_vmem [thread:$0]  %s40_s28, 512, %s42_s30, [#allocation3], %s427_s8, %s427_s8, %s428_s9  }
   0xd   :  { %s429_s1 = smov [#allocation9]  }
   0xe   :  { %s54_s10 = sshll.u32 %s429_s1, 4  ;;  %s55_s10 = int_to_ptr.vmem [resolvable:$true] %s54_s10 }
   0xf   :  { %60 = dma.hbm_to_vmem [thread:$0]  %s53_s7, 256, %s55_s10, [#allocation10], %s427_s8, %s427_s8, %s428_s9  }
  0x10   :  { %412 = dma.done.wait [#allocation5], 16  }
  0x11   :  { %413 = vsyncadd [#allocation5], 4294967280 }
  0x12   :  { %414 = dma.done.wait [#allocation7], 16  }
  0x13   :  { %415 = vsyncadd [#allocation7], 4294967280 }
  0x14   :  { %416 = dma.done.wait [#allocation3], 512  }
  0x15   :  { %417 = vsyncadd [#allocation3], 4294966784 }
  0x16   :  { %418 = dma.done.wait [#allocation10], 256  }
  0x17   :  { %419 = vsyncadd [#allocation10], 4294967040 }
  0x18   :  { %77 = sfence }
  0x19   :  { %v480_v0 = vld [vmem:[#allocation9 + $0x8] sm:$0xff]  ;;  %v482_v1 = vld [vmem:[#allocation9] sm:$0xff]  ;;  %vm142_vm0 = vcmask 130048   ;;  %v180_v3 = vld [vmem:[#allocation8 + $0x18] sm:$0xff]  ;;  %s80_s2 = sld [smem:[#allocation2]]  ;;  %s430_s13 = smov [#allocation12]  }
  0x1a   :  { %268 = vmatpush.msra.mxu2 %v480_v0  ;;  %270 = vmatpush.msra.mxu3 %v480_v0  ;;  %v141_v2 = vld [vmem:[#allocation8 + $0x8] sm:$0xff]  ;;  %v140_v4 = vld [vmem:[#allocation8] sm:$0xff]  ;;  %v179_v5 = vld [vmem:[#allocation8 + $0x10] sm:$0xff]  ;;  %s262_s3 = sld [smem:[#allocation2 + $0x1]]  ;;  %s239_s14 = sshll.u32 %s430_s13, 4  ;;  %s240_s14 = int_to_ptr.vmem [resolvable:$true] %s239_s14 }
  0x1b   :  { %163 = vmatpush.msra.mxu0 %v480_v0  ;;  %201 = vmatpush.msra.mxu1 %v480_v0  ;;  %s84_s11 = sld [smem:[#allocation6]]  ;;  %s241_s17 = sshll.u32 %s523_s5, 4  ;;  %s242_s17 = int_to_ptr.hbm [resolvable:$true] %s241_s17 }
  0x1c   :  { %269 = vmatpush.msra.mxu2 %v482_v1  ;;  %271 = vmatpush.msra.mxu3 %v482_v1  ;;  %s263_s12 = sld [smem:[#allocation6 + $0x1]]  ;;  %s431_s18 = smov [#allocation11]  }
  0x1d   :  { %265 = vmatmul.msk.f32.vlgmr.msra.gmra.mxu2 %vm142_vm0, %v141_v2  ;;  %267 = vmatmul.msk.f32.vlgmr.msra.gmra.mxu3 %vm142_vm0, %v180_v3  ;;  %s226_s19 = sshll.u32 %s431_s18, 4  ;;  %s228_s22 = sshll.u32 %s522_s4, 4  ;;  %s227_s19 = int_to_ptr.vmem [resolvable:$true] %s226_s19  ;;  %s229_s22 = int_to_ptr.hbm [resolvable:$true] %s228_s22 }
  0x1e   :  { %164 = vmatpush.msra.mxu0 %v482_v1  ;;  %202 = vmatpush.msra.mxu1 %v482_v1 }
  0x1f   :  { %264 = vmatmul.msk.f32.vlgmr.msra.gmra.mxu0 %vm142_vm0, %v140_v4  ;;  %266 = vmatmul.msk.f32.vlgmr.msra.gmra.mxu1 %vm142_vm0, %v179_v5  ;;  %v81_v6 = vstv %s80_s2 }
  0x20   :  { %v89_v7 = vstv %s262_s3  ;;  %v82_v8 = vmul.f32 %v81_v6, %v482_v1  ;;  %v83_v14 = vmul.f32 %v81_v6, %v480_v0 }
  0x21   :  { %v90_v9 = vmul.f32 %v89_v7, %v482_v1  ;;  %v85_v10 = vstv %s84_s11  ;;  %v91_v15 = vmul.f32 %v89_v7, %v480_v0 }
  0x22   :  { %v93_v11 = vstv %s263_s12  ;;  %v86_v12 = vadd.f32 %v85_v10, %v82_v8  ;;  %v87_v17 = vadd.f32 %v85_v10, %v83_v14 }
  0x23   :  { %v94_v13 = vadd.f32 %v93_v11, %v90_v9  ;;  %v95_v18 = vadd.f32 %v93_v11, %v91_v15 }
  0x25   :  { %v96_v16 = vmax.f32 %v86_v12, %v94_v13  ;;  %v97_v20 = vmax.f32 %v87_v17, %v95_v18 }
  0x27   :  { %v98_v19 = vsub.f32 %v86_v12, %v96_v16  ;;  %v104_v21 = vsub.f32 %v94_v13, %v96_v16  ;;  %v99_v23 = vsub.f32 %v87_v17, %v97_v20  ;;  %v105_v25 = vsub.f32 %v95_v18, %v97_v20 }
  0x29   :  { %v100_v22 = vmul.f32 1.442695, %v98_v19  ;;  %v106_v24 = vmul.f32 1.442695, %v104_v21  ;;  %v102_v26 = vmul.f32 1.442695, %v99_v23 }
  0x2a   :  { %v108_v27 = vmul.f32 1.442695, %v105_v25 }
  0x2b   :  { %280 = vpow2.f32 %v100_v22 }
  0x2c   :  { %282 = vpow2.f32 %v106_v24 }
  0x2d   :  { %284 = vpow2.f32 %v102_v26 }
  0x2e   :  { %286 = vpow2.f32 %v108_v27 }
  0x31   :  { %v281_v28 = vpop.eup %280 }
  0x32   :  { %v283_v29 = vpop.eup %282 }
  0x33   :  { %v285_v30 = vpop.eup %284  ;;  %v110_v31 = vadd.f32 %v283_v29, %v281_v28 }
  0x34   :  { %v287_v32 = vpop.eup %286 }
  0x35   :  { %288 = vrcp.f32 %v110_v31  ;;  %v111_v33 = vadd.f32 %v287_v32, %v285_v30  ;;  %vm117_vm1 = vweird.f32 %v110_v31  ;;  %v123_v41 = vand.u32 2147483648, %v110_v31 }
  0x36   :  { %v121_v43 = vand.u32 2147483647, %v110_v31 }
  0x37   :  { %290 = vrcp.f32 %v111_v33  ;;  %vm131_vm4 = vweird.f32 %v111_v33  ;;  %v124_v45 = vor.u32 1.1754944e-38, %v123_v41  ;;  %v137_v46 = vand.u32 2147483648, %v111_v33 }
  0x38   :  { %vm122_vm6 = vcmp.eq.f32.partialorder %v121_v43, 8.507059e+37  ;;  %v135_v49 = vand.u32 2147483647, %v111_v33 }
  0x39   :  { %v138_v51 = vor.u32 1.1754944e-38, %v137_v46 }
  0x3a   :  { %vm136_vm8 = vcmp.eq.f32.partialorder %v135_v49, 8.507059e+37 }
  0x3b   :  { %v289_v34 = vpop.eup %288 }
  0x3c   :  { %v113_v35 = vmul.f32 %v289_v34, %v110_v31  ;;  %vm118_vm2 = vweird.f32 %v289_v34 }
  0x3d   :  { %v291_v36 = vpop.eup %290  ;;  %vm119_vm3 = vmor %vm117_vm1, %vm118_vm2 }
  0x3e   :  { %v114_v37 = vsub.f32 1.0, %v113_v35  ;;  %v127_v38 = vmul.f32 %v291_v36, %v111_v33  ;;  %vm132_vm5 = vweird.f32 %v291_v36 }
  0x3f   :  { %vm133_vm7 = vmor %vm131_vm4, %vm132_vm5 }
  0x40   :  { %v115_v39 = vmul.f32 %v289_v34, %v114_v37  ;;  %v128_v40 = vsub.f32 1.0, %v127_v38 }
  0x42   :  { %v116_v42 = vadd.f32 %v289_v34, %v115_v39  ;;  %v129_v44 = vmul.f32 %v291_v36, %v128_v40 }
  0x44   :  { %v120_v47 = vsel %vm119_vm3, %v289_v34, %v116_v42  ;;  %v130_v48 = vadd.f32 %v291_v36, %v129_v44 }
  0x45   :  { %v125_v50 = vsel %vm122_vm6, %v124_v45, %v120_v47 }
  0x46   :  { %v134_v52 = vsel %vm133_vm7, %v291_v36, %v130_v48  ;;  %v172_v53 = vmul.f32 %v281_v28, %v125_v50  ;;  %v210_v54 = vmul.f32 %v283_v29, %v125_v50 }
  0x47   :  { %v139_v55 = vsel %vm136_vm8, %v138_v51, %v134_v52 }
  0x48   :  { %v173_v59 = vmul.f32 %v285_v30, %v139_v55  ;;  %v211_v61 = vmul.f32 %v287_v32, %v139_v55 }
  0x9c   :  { %v166_v56 = vpop.f32.mrf.mxu0  ;;  %v204_v57 = vpop.f32.mrf.mxu1 }
  0x9d   :  { %v174_v58 = vmul.f32 %v172_v53, %v166_v56  ;;  %v212_v60 = vmul.f32 %v210_v54, %v204_v57 }
  0x9f   :  { %v214_v62 = vadd.f32 %v212_v60, %v174_v58 }
  0xa0   :  { %v169_v63 = vpop.f32.mrf.mxu2  ;;  %v207_v2 = vpop.f32.mrf.mxu3 }
  0xa1   :  { %v175_v3 = vmul.f32 %v173_v59, %v169_v63  ;;  %v218_v4 = vsub.f32 %v482_v1, %v214_v62  ;;  %216 = vst.msk [vmem:[#allocation12] sm:$0xff] %vm142_vm0, %v214_v62  ;;  %v213_v5 = vmul.f32 %v211_v61, %v207_v2 }
  0xa3   :  { %220 = vst.msk [vmem:[#allocation11] sm:$0xff] %vm142_vm0, %v218_v4  ;;  %v215_v6 = vadd.f32 %v213_v5, %v175_v3 }
  0xa5   :  { %v219_v7 = vsub.f32 %v480_v0, %v215_v6  ;;  %217 = vst.msk [vmem:[#allocation12 + $0x8] sm:$0xff] %vm142_vm0, %v215_v6 }
  0xa6   :  { %247 = dma.vmem_to_hbm [thread:$0]  %s240_s14, 256, %s242_s17, [#allocation13], %s427_s8, %s427_s8, %s428_s9  }
  0xa7   :  { %221 = vst.msk [vmem:[#allocation11 + $0x8] sm:$0xff] %vm142_vm0, %v219_v7 }
  0xa8   :  { %234 = dma.vmem_to_hbm [thread:$0]  %s227_s19, 256, %s229_s22, [#allocation4], %s427_s8, %s427_s8, %s428_s9  }
  0xa9   :  { %420 = dma.done.wait [#allocation4], 256  }
  0xaa   :  { %421 = vsyncadd [#allocation4], 4294967040 }
  0xab   :  { %422 = dma.done.wait [#allocation13], 256  }
  0xac   :  { %423 = vsyncadd [#allocation13], 4294967040 }
  0xad   :  { %256 = vsyncpa [#allocation3], 1 }
  0xae   :  { %257 = vsyncpa [#allocation10], 1 }
  0xaf   :  { %258 = vsyncpa [#allocation4], 1 }
  0xb0   :  { %259 = vsyncpa [#allocation13], 1 }
  0xb1   :  { %260 = vsyncpa [#allocation5], 1 }
  0xb2   :  { %261 = vsyncpa [#allocation7], 1 }

</bundles_post_ra>
